<compile_context>
chip_gen: v6e
topology: v6e:2x2x1
jax: 0.10.0
libtpu: 0.0.40
codegen_flags: <defaults>
</compile_context>

<pallas_src>
import functools
import math

import jax
import jax.numpy as jnp
from jax.experimental import pallas as pl
from jax.experimental.pallas import tpu as pltpu

D_MODEL = 32        # small demo d_model (module default is 1024; kernel is size-agnostic)
LATENT_DIM = 80     # module constant
_LANE = 128


def _round_up(x, m):
    return (x + m - 1) // m * m


LATENT_PAD = _round_up(LATENT_DIM, _LANE)   # 128: lane-dense output width


# ---------------------------------------------------------------------------
# Kernel
# ---------------------------------------------------------------------------
def _latent_sampling_kernel(x_ref, w_ref, b_ref, eps_ref, out_ref):
    """One row-tile of the latent sampling head.

    x_ref:   (TM, D)       input activations (bf16 or f32)
    w_ref:   (D, 2*LP)     fused [Wm | Wv] weights (lane-padded, transposed)
    b_ref:   (1, 2*LP)     fused [bm | bv] biases  (f32, lane-padded)
    eps_ref: (TM, LP)      pre-sampled N(0,1) noise
    out_ref: (TM, 3*LP)    fused output: [z | mean | log_var] in 128-aligned bands
    """
    lp = out_ref.shape[-1] // 3

    # Single fused MXU matmul for both projections; accumulate in f32.
    proj = jnp.dot(x_ref[...], w_ref[...], preferred_element_type=jnp.float32)
    proj = proj + b_ref[...].astype(jnp.float32)

    mean = proj[:, :lp]          # 128-aligned lane slices: no cross-tile copies
    log_var = proj[:, lp:]

    std = jnp.exp(0.5 * log_var)
    z = mean + std * eps_ref[...].astype(jnp.float32)

    # Lane-dense, 128-aligned stores into the fused output slab.
    out_ref[:, :lp] = z.astype(out_ref.dtype)
    out_ref[:, lp:] = proj.astype(out_ref.dtype)      # mean | log_var bands


# ---------------------------------------------------------------------------
# Wrapper
# ---------------------------------------------------------------------------
def pack_params(wm, bm, wv, bv, dtype=jnp.bfloat16):
    """PyTorch-layout params -> fused, lane-padded kernel layout.

    wm, wv: [LATENT_DIM, D]  (nn.Linear weight, [out, in])
    bm, bv: [LATENT_DIM]
    returns w_fused [D, 2*LP] (dtype), b_fused [1, 2*LP] (f32)
    (columns [0:LATENT_DIM] = mean head, [LP:LP+LATENT_DIM] = log_var head)
    """
    l, d = wm.shape
    lp = _round_up(l, _LANE)
    w = jnp.zeros((d, 2 * lp), dtype)
    w = w.at[:, :l].set(wm.T.astype(dtype))
    w = w.at[:, lp:lp + l].set(wv.T.astype(dtype))
    b = jnp.zeros((1, 2 * lp), jnp.float32)
    b = b.at[:, :l].set(bm.astype(jnp.float32)[None, :])
    b = b.at[:, lp:lp + l].set(bv.astype(jnp.float32)[None, :])
    return w, b


@functools.partial(jax.jit, static_argnames=("latent_dim", "tm"))
def latent_sampling_forward(x, w_fused, b_fused, key, *,
                            latent_dim=LATENT_DIM, tm=1024):
    """x: [..., D]; w_fused: [D, 2*LP]; b_fused: [1, 2*LP]; key: jax PRNG key."""
    orig_shape = x.shape
    d = orig_shape[-1]
    x2 = x.reshape(-1, d)
    n = x2.shape[0]

    lp2 = w_fused.shape[1]
    lp = lp2 // 2

    # Row tile: as large as requested but never larger than the (8-rounded)
    # row count; rows are padded to a multiple of the tile.
    tm_eff = min(tm, _round_up(n, 8))
    n_pad = _round_up(n, tm_eff)
    if n_pad != n:
        x2 = jnp.pad(x2, ((0, n_pad - n), (0, 0)))

    # eps ~ N(0,1), generated host-side (torch.randn_like equivalent) and
    # streamed in lane-padded so every kernel access is lane-dense.
    eps = jax.random.normal(key, (n_pad, lp), dtype=x2.dtype)

    grid = (n_pad // tm_eff,)
    x_spec = pl.BlockSpec((tm_eff, d), lambda i: (i, 0))
    w_spec = pl.BlockSpec((d, lp2), lambda i: (0, 0))      # grid-invariant
    b_spec = pl.BlockSpec((1, lp2), lambda i: (0, 0))      # grid-invariant
    eps_spec = pl.BlockSpec((tm_eff, lp), lambda i: (i, 0))
    out_spec = pl.BlockSpec((tm_eff, 3 * lp), lambda i: (i, 0))

    out_shape = jax.ShapeDtypeStruct((n_pad, 3 * lp), x.dtype)

    # Rough VMEM budget: double-buffered x / eps / fused output + weights.
    in_b = jnp.dtype(x2.dtype).itemsize
    w_b = jnp.dtype(w_fused.dtype).itemsize
    vmem_est = (2 * tm_eff * d * in_b
                + 2 * tm_eff * lp * in_b
                + 2 * tm_eff * 3 * lp * in_b
                + 2 * (d * lp2 * w_b + lp2 * 4))
    vmem_limit = int(min(max(vmem_est + (8 << 20), 32 << 20), 64 << 20))

    fused = pl.pallas_call(
        _latent_sampling_kernel,
        out_shape=out_shape,
        grid_spec=pltpu.PrefetchScalarGridSpec(
            num_scalar_prefetch=0,
            grid=grid,
            in_specs=[x_spec, w_spec, b_spec, eps_spec],
            out_specs=out_spec,
        ),
        compiler_params=pltpu.CompilerParams(
            dimension_semantics=("parallel",),
            vmem_limit_bytes=vmem_limit),
    )(x2, w_fused, b_fused, eps)

    out_sh = orig_shape[:-1] + (latent_dim,)
    z = fused[:n, 0 * lp:0 * lp + latent_dim].reshape(out_sh)
    mean = fused[:n, 1 * lp:1 * lp + latent_dim].reshape(out_sh)
    log_var = fused[:n, 2 * lp:2 * lp + latent_dim].reshape(out_sh)
    return z, mean, log_var


# ---------------------------------------------------------------------------
# Demo / correctness check
# ---------------------------------------------------------------------------
if __name__ == "__main__":
    key = jax.random.PRNGKey(0)
    k_param, k_x, k_eps = jax.random.split(key, 3)

    batch, seq = 2, 8
    d_model = D_MODEL

    # nn.Linear-style init (PyTorch layout: weight [out, in], bias [out]).
    k1, k2, k3, k4 = jax.random.split(k_param, 4)
    bound = 1.0 / math.sqrt(d_model)
    wm = jax.random.uniform(k1, (LATENT_DIM, d_model), jnp.float32, -bound, bound)
    bm = jax.random.uniform(k2, (LATENT_DIM,), jnp.float32, -bound, bound)
    wv = jax.random.uniform(k3, (LATENT_DIM, d_model), jnp.float32, -bound, bound)
    bv = jax.random.uniform(k4, (LATENT_DIM,), jnp.float32, -bound, bound)

    x = jax.random.normal(k_x, (batch, seq, d_model), jnp.float32)

    # bf16 activations + bf16 fused weights (f32 accumulation inside the kernel).
    x_bf = x.astype(jnp.bfloat16)
    w_fused, b_fused = pack_params(wm, bm, wv, bv, dtype=jnp.bfloat16)

    z, mean, log_var = latent_sampling_forward(
        x_bf, w_fused, b_fused, k_eps, latent_dim=LATENT_DIM, tm=1024)
    jax.block_until_ready((z, mean, log_var))

    # Pure-JAX reference for the deterministic parts (same bf16-rounded inputs,
    # f32 math) — only the final bf16 output rounding differs.
    x2f = x_bf.astype(jnp.float32).reshape(-1, d_model)
    mean_ref = (x2f @ wm.astype(jnp.bfloat16).astype(jnp.float32).T + bm
                ).reshape(batch, seq, LATENT_DIM)
    lv_ref = (x2f @ wv.astype(jnp.bfloat16).astype(jnp.float32).T + bv
              ).reshape(batch, seq, LATENT_DIM)
    assert jnp.allclose(mean.astype(jnp.float32), mean_ref, atol=3e-2, rtol=3e-2), \
        "mean mismatch"
    assert jnp.allclose(log_var.astype(jnp.float32), lv_ref, atol=3e-2, rtol=3e-2), \
        "log_var mismatch"

    # z = mean + std * eps with eps ~ N(0,1); verify the implied eps is finite
    # and standard-normal-ish (the noise stream is deterministic in k_eps).
    zf = z.astype(jnp.float32)
    mf = mean.astype(jnp.float32)
    lvf = log_var.astype(jnp.float32)
    eps_implied = (zf - mf) * jnp.exp(-0.5 * lvf)
    assert jnp.all(jnp.isfinite(eps_implied)), "non-finite z"
    assert jnp.abs(eps_implied.mean()) < 0.2, "eps mean off"
    assert jnp.abs(eps_implied.std() - 1.0) < 0.2, "eps std off"

    print("KERNEL_OK")
</pallas_src>

<mosaic_0001>
module attributes {stable_mosaic.version = 11 : i64} {
  func.func @_latent_sampling_kernel(%arg0: i32, %arg1: memref<16x32xbf16, #tpu.memory_space<vmem>>, %arg2: memref<32x256xbf16, #tpu.memory_space<vmem>>, %arg3: memref<1x256xf32, #tpu.memory_space<vmem>>, %arg4: memref<16x128xbf16, #tpu.memory_space<vmem>>, %arg5: memref<16x384xbf16, #tpu.memory_space<vmem>>) attributes {dimension_semantics = [#tpu.dimension_semantics<parallel>], iteration_bounds = array<i64: 1>, scalar_prefetch = 0 : i64, scratch_operands = 0 : i64, tpu.core_type = #tpu.core_type<tc>, window_params = [{transform_indices = @transform_0, window_bounds = array<i64: 16, 32>}, {pipeline_mode = #tpu.pipeline_mode<synchronous>, transform_indices = @transform_1, window_bounds = array<i64: 32, 256>}, {pipeline_mode = #tpu.pipeline_mode<synchronous>, transform_indices = @transform_2, window_bounds = array<i64: 1, 256>}, {transform_indices = @transform_3, window_bounds = array<i64: 16, 128>}, {transform_indices = @transform_4, window_bounds = array<i64: 16, 384>}]} {
    %c0 = arith.constant 0 : index
    %c0_0 = arith.constant 0 : index
    %0 = vector.load %arg1[%c0, %c0_0] : memref<16x32xbf16, #tpu.memory_space<vmem>>, vector<16x32xbf16>
    %c0_1 = arith.constant 0 : index
    %c0_2 = arith.constant 0 : index
    %1 = vector.load %arg2[%c0_1, %c0_2] : memref<32x256xbf16, #tpu.memory_space<vmem>>, vector<32x256xbf16>
    %cst = arith.constant dense<0.000000e+00> : vector<16x256xf32>
    %2 = tpu.matmul %0, %1, %cst {dimension_numbers = #tpu.dot_dimension_numbers<[1], [0], [0], [1], [0, 0, 1, 1], [], []>} : vector<16x32xbf16>, vector<32x256xbf16>, vector<16x256xf32> -> vector<16x256xf32>
    %c0_3 = arith.constant 0 : index
    %c0_4 = arith.constant 0 : index
    %3 = vector.load %arg3[%c0_3, %c0_4] : memref<1x256xf32, #tpu.memory_space<vmem>>, vector<1x256xf32>
    %4 = vector.broadcast %3 : vector<1x256xf32> to vector<16x256xf32>
    %5 = arith.addf %2, %4 : vector<16x256xf32>
    %6 = vector.extract_strided_slice %5 {offsets = [0, 0], sizes = [16, 128], strides = [1, 1]} : vector<16x256xf32> to vector<16x128xf32>
    %7 = vector.extract_strided_slice %5 {offsets = [0, 128], sizes = [16, 128], strides = [1, 1]} : vector<16x256xf32> to vector<16x128xf32>
    %cst_5 = arith.constant 5.000000e-01 : f32
    %8 = vector.broadcast %cst_5 : f32 to vector<16x128xf32>
    %9 = arith.mulf %8, %7 : vector<16x128xf32>
    %10 = math.exp %9 : vector<16x128xf32>
    %c0_6 = arith.constant 0 : index
    %c0_7 = arith.constant 0 : index
    %11 = vector.load %arg4[%c0_6, %c0_7] : memref<16x128xbf16, #tpu.memory_space<vmem>>, vector<16x128xbf16>
    %12 = arith.extf %11 : vector<16x128xbf16> to vector<16x128xf32>
    %13 = arith.mulf %10, %12 : vector<16x128xf32>
    %14 = arith.addf %6, %13 : vector<16x128xf32>
    %15 = arith.truncf %14 : vector<16x128xf32> to vector<16x128xbf16>
    %c0_8 = arith.constant 0 : index
    %c0_9 = arith.constant 0 : index
    %16 = vector.load %arg5[%c0_8, %c0_9] : memref<16x384xbf16, #tpu.memory_space<vmem>>, vector<16x128xbf16>
    tpu.vector_store %arg5[%c0_8, %c0_9], %15 {strides = array<i32>} : memref<16x384xbf16, #tpu.memory_space<vmem>>, vector<16x128xbf16>,
    %17 = arith.truncf %5 : vector<16x256xf32> to vector<16x256xbf16>
    %c0_10 = arith.constant 0 : index
    %c128 = arith.constant 128 : index
    %18 = vector.load %arg5[%c0_10, %c128] : memref<16x384xbf16, #tpu.memory_space<vmem>>, vector<16x256xbf16>
    tpu.vector_store %arg5[%c0_10, %c128], %17 {strides = array<i32>} : memref<16x384xbf16, #tpu.memory_space<vmem>>, vector<16x256xbf16>,
    return
  }
  func.func @transform_0(%arg0: i32) -> (i32, i32) {
    %c0_i32 = arith.constant 0 : i32
    %c0_i32_0 = arith.constant 0 : i32
    return %arg0, %c0_i32 : i32, i32
  }
  func.func @transform_1(%arg0: i32) -> (i32, i32) {
    %c0_i32 = arith.constant 0 : i32
    %c0_i32_0 = arith.constant 0 : i32
    %c0_i32_1 = arith.constant 0 : i32
    return %c0_i32, %c0_i32_0 : i32, i32
  }
  func.func @transform_2(%arg0: i32) -> (i32, i32) {
    %c0_i32 = arith.constant 0 : i32
    %c0_i32_0 = arith.constant 0 : i32
    %c0_i32_1 = arith.constant 0 : i32
    return %c0_i32, %c0_i32_0 : i32, i32
  }
  func.func @transform_3(%arg0: i32) -> (i32, i32) {
    %c0_i32 = arith.constant 0 : i32
    %c0_i32_0 = arith.constant 0 : i32
    return %arg0, %c0_i32 : i32, i32
  }
  func.func @transform_4(%arg0: i32) -> (i32, i32) {
    %c0_i32 = arith.constant 0 : i32
    %c0_i32_0 = arith.constant 0 : i32
    return %arg0, %c0_i32 : i32, i32
  }
}

</mosaic_0001>

<bundles_post_ra>
// kernel: latent_sampling_forward.1
= control target key start
LH: loop header
LB: loop body
LE: loop exit
PB: predicated region body
PF: predicated region fallthrough
CT: control target
= control target key end

     0   :  { %v180_v1 = vmov 0   ;;  %vm61_vm0 = vcmask 261120   ;;  %v26_v6 = vlaneseq  ;;  %s239_s1 = inlined_call_operand.vmem [shape: bf16[32,256], index: 1, kind: input, shape index: {}]   ;;  %s240_s0 = inlined_call_operand.vmem [shape: bf16[16,32], index: 0, kind: input, shape index: {}]   ;;  %s241_s2 = inlined_call_operand.vmem [shape: f32[1,256], index: 2, kind: input, shape index: {}]   ;;  %s242_s4 = inlined_call_operand.vmem [shape: bf16[16,384], index: 4, kind: output, shape index: {}]   ;;  %s243_s3 = inlined_call_operand.vmem [shape: bf16[16,128], index: 3, kind: input, shape index: {}]  }
   0x1   :  { %v169_v0 = vld [vmem:[%s239_s1 + $0x14] ss:$8 sps:$4 sm:$0xff]   ;;  %97 = vmatprep.mubr.bf16.mxu0 %v180_v1  ;;  %v171_v2 = vld [vmem:[%s239_s1 + $0x10] ss:$8 sps:$4 sm:$0xff]   ;;  %v172_v3 = vld [vmem:[%s239_s1 + $0x4] ss:$8 sps:$4 sm:$0xff]  }
   0x2   :  { %77 = vmatprep.subr.bf16.mxu0 %v169_v0  ;;  %v174_v4 = vld [vmem:[%s239_s1] ss:$8 sps:$4 sm:$0xff]   ;;  %v27_v7 = vshrl.u32 %v26_v6, 7 }
   0x3   :  { %78 = vmatpush1.bf16.msra.mxu0 %v171_v2  ;;  %v175_v5 = vld [vmem:[%s240_s0] sm:$0xff]  }
   0x4   :  { %79 = vmatprep.subr.bf16.mxu0 %v172_v3  ;;  %v28_v8 = vsub.s32 0, %v27_v7  ;;  %v32_v9 = vsub.s32 1, %v27_v7  ;;  %v24_v10 = vld [vmem:[%s241_s2] sm:$0x3] }
   0x5   :  { %v165_v27 = vld [vmem:[%s243_s3] sm:$0xff]  }
   0x6   :  { %v29_v11 = vrot.slane %v24_v10, %v28_v8  ;;  %v33_v12 = vrot.slane %v24_v10, %v32_v9  ;;  %v166_v28 = vunpack.c.l.bf16 %v165_v27  ;;  %v167_v31 = vunpack.c.h.bf16 %v165_v27 }
   0x7   :  { %80 = vmatpush1.bf16.msra.mxu0 %v174_v4 }
   0xa   :  { %155 = vmatmul.mubr.msk.bf16.vlgmr.msra.gmra.mxu0 %vm61_vm0, %v175_v5 }
  0xca   :  { %v99_v13 = vpop.f32.mrf.mxu0 }
  0xcb   :  { %v100_v15 = vadd.f32 %v99_v13, %v29_v11 }
  0xcc   :  { %v101_v14 = vpop.f32.mrf.mxu0 }
  0xcd   :  { %v102_v16 = vadd.f32 %v101_v14, %v33_v12 }
  0xce   :  { %v103_v17 = vpop.f32.mrf.mxu0 }
  0xcf   :  { %v108_v18 = vmul.f32 0.5, %v102_v16  ;;  %v162_v19 = vpack.c.bf16 %v102_v16, %v100_v15  ;;  %v104_v22 = vadd.f32 %v103_v17, %v29_v11 }
  0xd0   :  { %v105_v20 = vpop.f32.mrf.mxu0 }
  0xd1   :  { %v110_v21 = vmul.f32 1.442695, %v108_v18  ;;  %144 = vst [vmem:[%s242_s4 + $0x4] sm:$0xff] %v162_v19  ;;  %v106_v23 = vadd.f32 %v105_v20, %v33_v12 }
  0xd3   :  { %176 = vpow2.f32 %v110_v21  ;;  %v109_v24 = vmul.f32 0.5, %v106_v23  ;;  %v163_v25 = vpack.c.bf16 %v106_v23, %v104_v22 }
  0xd5   :  { %v112_v26 = vmul.f32 1.442695, %v109_v24  ;;  %145 = vst [vmem:[%s242_s4 + $0x10] sm:$0xff] %v163_v25 }
  0xd7   :  { %178 = vpow2.f32 %v112_v26 }
  0xe0   :  { %v177_v29 = vpop.eup %176 }
  0xe1   :  { %v118_v30 = vmul.f32 %v177_v29, %v166_v28 }
  0xe3   :  { %v120_v32 = vadd.f32 %v118_v30, %v100_v15 }
  0xe4   :  { %v179_v33 = vpop.eup %178 }
  0xe5   :  { %v160_v34 = vpack.c.bf16 %v120_v32, %v120_v32  ;;  %v119_v35 = vmul.f32 %v179_v33, %v167_v31 }
  0xe7   :  { %130 = vst [vmem:[%s242_s4] sm:$0xf] %v160_v34  ;;  %v121_v36 = vadd.f32 %v119_v35, %v104_v22 }
  0xe9   :  { %v161_v37 = vpack.c.bf16 %v121_v36, %v121_v36 }
  0xeb   :  { %131 = vst [vmem:[%s242_s4 + $0xc] sm:$0xf] %v161_v37 }

</bundles_post_ra>
